<compile_context>
chip_gen: v5e
topology: v5e:2x2
jax: 0.10.0
libtpu: 0.0.40
codegen_flags: <defaults>
</compile_context>

<pallas_src>
import functools

import jax
import jax.numpy as jnp
from jax import lax
from jax.experimental import pallas as pl
from jax.experimental.pallas import tpu as pltpu


def _round_up(a, b):
    return ((a + b - 1) // b) * b


def _phase_params(r, k, s, p):
    """Sub-pixel phase r: tap alignment k0, base input offset, #taps."""
    k0 = (r + p) % s
    base = (r + p) // s
    nt = len(range(k0, k, s))
    return k0, base, nt


def _fused_kernel(x_ref, xh_ref, w_ref, a_ref, o_ref, xw_ref, p_ref, *,
                  tm, th, cin, k_taps, k_pad, offsets):
    """One (n, m-tile) step of the fused transposed-conv + PReLU.

    x_ref : (1, Cin, tm)        main flat-input block
    xh_ref: (1, Cin, th)        halo block (next th flat elements)
    w_ref : (CA_pad, K_pad)     resident fused phase weights (+bias column)
    a_ref : (1, 1) f32 SMEM     PReLU alpha
    o_ref : (1, CA_pad, tm)     lane-dense output tile (f32)
    xw_ref: (Cin, tm + th)      scratch: contiguous input window
    p_ref : (K_pad, tm)         scratch: implicit-im2col patch tile
    """
    # Contiguous window [i*tm, i*tm + tm + th) of the flat input.
    xw_ref[:, :tm] = x_ref[0]
    xw_ref[:, tm:] = xh_ref[0]

    # Implicit im2col: every tap is a *static* shifted slice of the window.
    for t, off in enumerate(offsets):
        p_ref[t * cin:(t + 1) * cin, :] = xw_ref[:, off:off + tm]

    # Bias row (ones) + zero padding rows.  Rewritten every step so each
    # TensorCore's private scratch is valid under megacore partitioning.
    pad_rows = k_pad - k_taps
    row_ids = lax.broadcasted_iota(jnp.int32, (pad_rows, tm), 0)
    p_ref[k_taps:, :] = jnp.where(row_ids == 0, 1.0, 0.0).astype(p_ref.dtype)

    # (CA_pad, K_pad) @ (K_pad, tm) on the MXU with f32 accumulation,
    # bias already folded in via the ones row; then PReLU.
    y = jnp.dot(w_ref[...], p_ref[...], preferred_element_type=jnp.float32)
    alpha = a_ref[0, 0]
    o_ref[0] = jnp.where(y > 0, y, alpha * y)


def trans_conv_with_prelu(x, weight, bias, alpha, *, stride, padding,
                          output_padding, target_tile_m=512):
    """ConvTranspose2d + PReLU as a single fused Pallas kernel.

    x:      (N, Cin, H, W)      f32 (cast to bf16 for the matmul when Cin even)
    weight: (Cin, Cout, kH, kW) PyTorch ConvTranspose2d layout
    bias:   (Cout,)
    alpha:  scalar PReLU slope
    """
    N, Cin, H, W = x.shape
    Cin_w, Cout, kH, kW = weight.shape
    assert Cin == Cin_w
    s, p, op = int(stride), int(padding), int(output_padding)
    Hout = (H - 1) * s - 2 * p + kH + op
    Wout = (W - 1) * s - 2 * p + kW + op

    # ---- static sub-pixel geometry / unified tap window -------------------
    ph = [_phase_params(r, kH, s, p) for r in range(s)]
    pw = [_phase_params(r, kW, s, p) for r in range(s)]
    lo_h = min(b - (t - 1) for _, b, t in ph if t > 0)
    hi_h = max(b for _, b, t in ph if t > 0)
    lo_w = min(b - (t - 1) for _, b, t in pw if t > 0)
    hi_w = max(b for _, b, t in pw if t > 0)
    L_h, L_w = hi_h - lo_h + 1, hi_w - lo_w + 1
    Qh, Qw = -(-Hout // s), -(-Wout // s)           # phase-grid extents

    pad_t = max(0, -lo_h)
    pad_b = max(0, Qh - 1 + hi_h - (H - 1))
    pad_l = max(0, -lo_w)
    pad_r = max(0, Qw - 1 + hi_w - (W - 1))
    a_h, a_w = lo_h + pad_t, lo_w + pad_l
    Hp, Wp = H + pad_t + pad_b, W + pad_l + pad_r

    # Flat-index shift of each tap (static).
    offsets = [(a_h + u) * Wp + (a_w + v) for u in range(L_h) for v in range(L_w)]
    off_max = max(offsets)

    n_taps = L_h * L_w
    k_taps = Cin * n_taps
    CA = s * s * Cout
    # bf16 operands (f32 accumulate) when tap rows stay packed-sublane aligned.
    compute_dtype = jnp.bfloat16 if Cin % 2 == 0 else jnp.float32
    itemsize = 2 if compute_dtype == jnp.bfloat16 else 4
    k_align = 16 if compute_dtype == jnp.bfloat16 else 8
    K_pad = _round_up(k_taps + 1, k_align)          # +1 = folded bias row
    CA_pad = _round_up(CA, 8)

    # ---- tiling of the flattened output-pixel axis ------------------------
    M = Qh * Wp                                     # includes gutter columns
    TH = max(128, _round_up(off_max, 128))          # halo >= max tap shift
    TM = TH * max(1, -(-min(M, target_tile_m) // TH))
    Mp = _round_up(M, TM)
    n_m = Mp // TM
    Lx = _round_up(max(Mp + TH, Hp * Wp), 128)      # flat input length

    # ---- pad + flatten the input ONCE --------------------------------------
    xb = x.astype(compute_dtype)
    xb = jnp.pad(xb, ((0, 0), (0, 0), (pad_t, pad_b), (pad_l, pad_r)))
    xflat = xb.reshape(N, Cin, Hp * Wp)
    xflat = jnp.pad(xflat, ((0, 0), (0, 0), (0, Lx - Hp * Wp)))

    # ---- fused phase weight matrix (CA_pad, K_pad), bias column folded ----
    wf = weight.astype(jnp.float32)
    phase_mats = []
    for r_h in range(s):
        k0h, bh, Th = ph[r_h]
        for r_w in range(s):
            k0w, bw, Tw = pw[r_w]
            taps = []
            for u in range(L_h):
                jh = bh - lo_h - u
                kh = jh * s + k0h
                ok_h = 0 <= jh < Th
                for v in range(L_w):
                    jw = bw - lo_w - v
                    kw = jw * s + k0w
                    ok_w = 0 <= jw < Tw
                    if ok_h and ok_w:
                        taps.append(wf[:, :, kh, kw].T)        # (Cout, Cin)
                    else:
                        taps.append(jnp.zeros((Cout, Cin), jnp.float32))
            phase_mats.append(jnp.concatenate(taps, axis=1))   # (Cout, k_taps)
    w_all = jnp.concatenate(phase_mats, axis=0)                # (CA, k_taps)
    bias_col = jnp.tile(bias.astype(jnp.float32), s * s)[:, None]
    w_all = jnp.concatenate([w_all, bias_col], axis=1)         # (CA, k_taps+1)
    w_all = jnp.pad(w_all, ((0, CA_pad - CA), (0, K_pad - (k_taps + 1))))
    w_all = w_all.astype(compute_dtype)

    alpha_arr = jnp.asarray(alpha, jnp.float32).reshape(1, 1)

    kernel = functools.partial(
        _fused_kernel, tm=TM, th=TH, cin=Cin, k_taps=k_taps, k_pad=K_pad,
        offsets=tuple(offsets))

    # VMEM: double-buffered ins/outs + scratch, with 2x headroom (v7x-safe).
    vmem_bytes = (2 * (Cin * TM + Cin * TH + CA_pad * K_pad) * itemsize
                  + 2 * CA_pad * TM * 4
                  + (Cin * (TM + TH) + K_pad * TM) * itemsize)
    vmem_limit = int(min(60 * 2 ** 20, max(16 * 2 ** 20, 2 * vmem_bytes)))

    out_flat = pl.pallas_call(
        kernel,
        out_shape=jax.ShapeDtypeStruct((N, CA_pad, Mp), jnp.float32),
        grid=(N, n_m),
        in_specs=[
            pl.BlockSpec((1, Cin, TM), lambda n, i: (n, 0, i)),
            pl.BlockSpec((1, Cin, TH),
                         lambda n, i: (n, 0, (i + 1) * (TM // TH))),
            pl.BlockSpec((CA_pad, K_pad), lambda n, i: (0, 0)),
            pl.BlockSpec(memory_space=pltpu.MemorySpace.SMEM),
        ],
        out_specs=pl.BlockSpec((1, CA_pad, TM), lambda n, i: (n, 0, i)),
        scratch_shapes=[
            pltpu.VMEM((Cin, TM + TH), compute_dtype),
            pltpu.VMEM((K_pad, TM), compute_dtype),
        ],
        compiler_params=pltpu.CompilerParams(
            dimension_semantics=("parallel", "parallel"),
            vmem_limit_bytes=vmem_limit),
    )(xflat, xflat, w_all, alpha_arr)

    # ---- single pixel-shuffle assembly (one transpose + reshape + slice) ---
    y = out_flat[:, :CA, :Qh * Wp].reshape(N, s, s, Cout, Qh, Wp)[..., :Qw]
    y = jnp.transpose(y, (0, 3, 4, 1, 5, 2))        # (N, Cout, Qh, s, Qw, s)
    y = y.reshape(N, Cout, Qh * s, Qw * s)[:, :, :Hout, :Wout]
    return y


def _reference(x, weight, bias, alpha, *, stride, padding, output_padding):
    """Plain-JAX reference using lax.conv_general_dilated (independent path)."""
    Cin, Cout, kH, kW = weight.shape
    s, p, op = stride, padding, output_padding
    w_conv = jnp.transpose(weight[:, :, ::-1, ::-1], (1, 0, 2, 3))  # OIHW
    y = lax.conv_general_dilated(
        x.astype(jnp.float32), w_conv.astype(jnp.float32),
        window_strides=(1, 1),
        padding=[(kH - 1 - p, kH - 1 - p + op), (kW - 1 - p, kW - 1 - p + op)],
        lhs_dilation=(s, s),
        dimension_numbers=("NCHW", "OIHW", "NCHW"))
    y = y + bias[None, :, None, None]
    return jnp.where(y > 0, y, alpha * y)


if __name__ == "__main__":
    N, Cin, Cout = 2, 4, 8
    H = W = 16
    kernel_size, stride, padding, output_padding = 3, 2, 1, 1

    key = jax.random.PRNGKey(0)
    kx, kw, kb = jax.random.split(key, 3)
    x = jax.random.normal(kx, (N, Cin, H, W), jnp.float32)
    # ConvTranspose2d weight layout: [in_channels, out_channels, kH, kW]
    fan_out = Cout * kernel_size * kernel_size
    weight = jax.random.normal(kw, (Cin, Cout, kernel_size, kernel_size),
                               jnp.float32) * (2.0 / fan_out) ** 0.5
    bias = jax.random.normal(kb, (Cout,), jnp.float32) * 0.01
    alpha = 0.25  # nn.PReLU() default init

    fwd = jax.jit(functools.partial(
        trans_conv_with_prelu, stride=stride, padding=padding,
        output_padding=output_padding))
    out = jax.block_until_ready(fwd(x, weight, bias, alpha))

    ref = _reference(x, weight, bias, alpha, stride=stride, padding=padding,
                     output_padding=output_padding)
    Hout = (H - 1) * stride - 2 * padding + kernel_size + output_padding
    assert out.shape == (N, Cout, Hout, Hout), out.shape
    # bf16 matmul operands (f32 accumulation) -> relaxed tolerance vs the
    # pure-f32 reference.
    assert jnp.allclose(out, ref, atol=3e-2, rtol=3e-2), float(
        jnp.max(jnp.abs(out - ref)))

    print("KERNEL_OK")
</pallas_src>

<mosaic_0001>
module attributes {stable_mosaic.version = 11 : i64} {
  func.func @_fused_kernel(%arg0: i32, %arg1: i32, %arg2: memref<1x4x384xbf16, #tpu.memory_space<vmem>>, %arg3: memref<1x4x128xbf16, #tpu.memory_space<vmem>>, %arg4: memref<32x32xbf16, #tpu.memory_space<vmem>>, %arg5: memref<1x1xf32, #tpu.memory_space<smem>>, %arg6: memref<1x32x384xf32, #tpu.memory_space<vmem>>, %arg7: memref<4x512xbf16, #tpu.memory_space<vmem>>, %arg8: memref<32x384xbf16, #tpu.memory_space<vmem>>) attributes {dimension_semantics = [#tpu.dimension_semantics<parallel>, #tpu.dimension_semantics<parallel>], iteration_bounds = array<i64: 2, 1>, scalar_prefetch = 0 : i64, scratch_operands = 2 : i64, tpu.core_type = #tpu.core_type<tc>, window_params = [{transform_indices = @transform_0, window_bounds = array<i64: 1, 4, 384>}, {transform_indices = @transform_1, window_bounds = array<i64: 1, 4, 128>}, {pipeline_mode = #tpu.pipeline_mode<synchronous>, transform_indices = @transform_2, window_bounds = array<i64: 32, 32>}, {transform_indices = @transform_3, window_bounds = array<i64: 1, 1>}, {transform_indices = @transform_4, window_bounds = array<i64: 1, 32, 384>}]} {
    %c0 = arith.constant 0 : index
    %c0_0 = arith.constant 0 : index
    %c0_1 = arith.constant 0 : index
    %0 = vector.load %arg2[%c0, %c0_0, %c0_1] : memref<1x4x384xbf16, #tpu.memory_space<vmem>>, vector<1x4x384xbf16>
    %1 = vector.shape_cast %0 : vector<1x4x384xbf16> to vector<4x384xbf16>
    %c0_2 = arith.constant 0 : index
    %c0_3 = arith.constant 0 : index
    %2 = vector.load %arg7[%c0_2, %c0_3] : memref<4x512xbf16, #tpu.memory_space<vmem>>, vector<4x384xbf16>
    tpu.vector_store %arg7[%c0_2, %c0_3], %1 {strides = array<i32>} : memref<4x512xbf16, #tpu.memory_space<vmem>>, vector<4x384xbf16>,
    %c0_4 = arith.constant 0 : index
    %c0_5 = arith.constant 0 : index
    %c0_6 = arith.constant 0 : index
    %3 = vector.load %arg3[%c0_4, %c0_5, %c0_6] : memref<1x4x128xbf16, #tpu.memory_space<vmem>>, vector<1x4x128xbf16>
    %4 = vector.shape_cast %3 : vector<1x4x128xbf16> to vector<4x128xbf16>
    %c0_7 = arith.constant 0 : index
    %c384 = arith.constant 384 : index
    %5 = vector.load %arg7[%c0_7, %c384] : memref<4x512xbf16, #tpu.memory_space<vmem>>, vector<4x128xbf16>
    tpu.vector_store %arg7[%c0_7, %c384], %4 {strides = array<i32>} : memref<4x512xbf16, #tpu.memory_space<vmem>>, vector<4x128xbf16>,
    %c0_8 = arith.constant 0 : index
    %c0_9 = arith.constant 0 : index
    %6 = vector.load %arg7[%c0_8, %c0_9] : memref<4x512xbf16, #tpu.memory_space<vmem>>, vector<4x384xbf16>
    %c0_10 = arith.constant 0 : index
    %c0_11 = arith.constant 0 : index
    %7 = vector.load %arg8[%c0_10, %c0_11] : memref<32x384xbf16, #tpu.memory_space<vmem>>, vector<4x384xbf16>
    tpu.vector_store %arg8[%c0_10, %c0_11], %6 {strides = array<i32>} : memref<32x384xbf16, #tpu.memory_space<vmem>>, vector<4x384xbf16>,
    %c0_12 = arith.constant 0 : index
    %c1 = arith.constant 1 : index
    %8 = vector.load %arg7[%c0_12, %c1] : memref<4x512xbf16, #tpu.memory_space<vmem>>, vector<4x384xbf16>
    %c4 = arith.constant 4 : index
    %c0_13 = arith.constant 0 : index
    %9 = vector.load %arg8[%c4, %c0_13] : memref<32x384xbf16, #tpu.memory_space<vmem>>, vector<4x384xbf16>
    tpu.vector_store %arg8[%c4, %c0_13], %8 {strides = array<i32>} : memref<32x384xbf16, #tpu.memory_space<vmem>>, vector<4x384xbf16>,
    %c0_14 = arith.constant 0 : index
    %c17 = arith.constant 17 : index
    %10 = vector.load %arg7[%c0_14, %c17] : memref<4x512xbf16, #tpu.memory_space<vmem>>, vector<4x384xbf16>
    %c8 = arith.constant 8 : index
    %c0_15 = arith.constant 0 : index
    %11 = vector.load %arg8[%c8, %c0_15] : memref<32x384xbf16, #tpu.memory_space<vmem>>, vector<4x384xbf16>
    tpu.vector_store %arg8[%c8, %c0_15], %10 {strides = array<i32>} : memref<32x384xbf16, #tpu.memory_space<vmem>>, vector<4x384xbf16>,
    %c0_16 = arith.constant 0 : index
    %c18 = arith.constant 18 : index
    %12 = vector.load %arg7[%c0_16, %c18] : memref<4x512xbf16, #tpu.memory_space<vmem>>, vector<4x384xbf16>
    %c12 = arith.constant 12 : index
    %c0_17 = arith.constant 0 : index
    %13 = vector.load %arg8[%c12, %c0_17] : memref<32x384xbf16, #tpu.memory_space<vmem>>, vector<4x384xbf16>
    tpu.vector_store %arg8[%c12, %c0_17], %12 {strides = array<i32>} : memref<32x384xbf16, #tpu.memory_space<vmem>>, vector<4x384xbf16>,
    %14 = tpu.iota {dimensions = array<i32: 0>} : vector<16x384xi32>
    %c0_i32 = arith.constant 0 : i32
    %15 = vector.broadcast %c0_i32 : i32 to vector<16x384xi32>
    %16 = arith.cmpi eq, %14, %15 : vector<16x384xi32>
    %cst = arith.constant 1.000000e+00 : f32
    %cst_18 = arith.constant 0.000000e+00 : f32
    %17 = vector.broadcast %cst : f32 to vector<16x384xf32>
    %18 = vector.broadcast %cst_18 : f32 to vector<16x384xf32>
    %19 = arith.select %16, %17, %18 : vector<16x384xi1>, vector<16x384xf32>
    %20 = arith.truncf %19 : vector<16x384xf32> to vector<16x384xbf16>
    %c16 = arith.constant 16 : index
    %c0_19 = arith.constant 0 : index
    %21 = vector.load %arg8[%c16, %c0_19] : memref<32x384xbf16, #tpu.memory_space<vmem>>, vector<16x384xbf16>
    tpu.vector_store %arg8[%c16, %c0_19], %20 {strides = array<i32>} : memref<32x384xbf16, #tpu.memory_space<vmem>>, vector<16x384xbf16>,
    %c0_20 = arith.constant 0 : index
    %c0_21 = arith.constant 0 : index
    %22 = vector.load %arg4[%c0_20, %c0_21] : memref<32x32xbf16, #tpu.memory_space<vmem>>, vector<32x32xbf16>
    %c0_22 = arith.constant 0 : index
    %c0_23 = arith.constant 0 : index
    %23 = vector.load %arg8[%c0_22, %c0_23] : memref<32x384xbf16, #tpu.memory_space<vmem>>, vector<32x384xbf16>
    %cst_24 = arith.constant dense<0.000000e+00> : vector<32x384xf32>
    %24 = tpu.matmul %22, %23, %cst_24 {dimension_numbers = #tpu.dot_dimension_numbers<[1], [0], [0], [1], [0, 0, 1, 1], [], []>} : vector<32x32xbf16>, vector<32x384xbf16>, vector<32x384xf32> -> vector<32x384xf32>
    %c0_25 = arith.constant 0 : index
    %c0_26 = arith.constant 0 : index
    %25 = memref.load %arg5[%c0_25, %c0_26] : memref<1x1xf32, #tpu.memory_space<smem>>
    %cst_27 = arith.constant 0.000000e+00 : f32
    %26 = vector.broadcast %cst_27 : f32 to vector<32x384xf32>
    %27 = arith.cmpf ogt, %24, %26 : vector<32x384xf32>
    %28 = vector.broadcast %25 : f32 to vector<32x384xf32>
    %29 = arith.mulf %28, %24 : vector<32x384xf32>
    %30 = arith.select %27, %24, %29 : vector<32x384xi1>, vector<32x384xf32>
    %c0_28 = arith.constant 0 : index
    %c0_29 = arith.constant 0 : index
    %c0_30 = arith.constant 0 : index
    %31 = vector.load %arg6[%c0_28, %c0_29, %c0_30] : memref<1x32x384xf32, #tpu.memory_space<vmem>>, vector<1x32x384xf32>
    %32 = vector.shape_cast %31 : vector<1x32x384xf32> to vector<32x384xf32>
    %33 = vector.shape_cast %30 : vector<32x384xf32> to vector<1x32x384xf32>
    tpu.vector_store %arg6[%c0_28, %c0_29, %c0_30], %33 {strides = array<i32>} : memref<1x32x384xf32, #tpu.memory_space<vmem>>, vector<1x32x384xf32>,
    return
  }
  func.func @transform_0(%arg0: i32, %arg1: i32) -> (i32, i32, i32) {
    %c0_i32 = arith.constant 0 : i32
    %c0_i32_0 = arith.constant 0 : i32
    return %arg0, %c0_i32, %arg1 : i32, i32, i32
  }
  func.func @transform_1(%arg0: i32, %arg1: i32) -> (i32, i32, i32) {
    %c1_i32 = arith.constant 1 : i32
    %0 = arith.addi %arg1, %c1_i32 : i32
    %c3_i32 = arith.constant 3 : i32
    %1 = arith.muli %0, %c3_i32 : i32
    %c0_i32 = arith.constant 0 : i32
    %c0_i32_0 = arith.constant 0 : i32
    return %arg0, %c0_i32, %1 : i32, i32, i32
  }
  func.func @transform_2(%arg0: i32, %arg1: i32) -> (i32, i32) {
    %c0_i32 = arith.constant 0 : i32
    %c0_i32_0 = arith.constant 0 : i32
    %c0_i32_1 = arith.constant 0 : i32
    return %c0_i32, %c0_i32_0 : i32, i32
  }
  func.func @transform_3(%arg0: i32, %arg1: i32) -> (i32, i32) {
    %c0_i32 = arith.constant 0 : i32
    %c0_i32_0 = arith.constant 0 : i32
    %c0_i32_1 = arith.constant 0 : i32
    return %c0_i32, %c0_i32_0 : i32, i32
  }
  func.func @transform_4(%arg0: i32, %arg1: i32) -> (i32, i32, i32) {
    %c0_i32 = arith.constant 0 : i32
    %c0_i32_0 = arith.constant 0 : i32
    return %arg0, %c0_i32, %arg1 : i32, i32, i32
  }
}

</mosaic_0001>

<bundles_post_ra>
// kernel: tile.1
= control target key start
LH: loop header
LB: loop body
LE: loop exit
PB: predicated region body
PF: predicated region fallthrough
CT: control target
= control target key end

     0   :  { %s112_s8 = smov 125   ;;  %s113_s9 = smov 123   ;;  %vm18_vm0 = vcmask 7168   ;;  %s145_s0 = inlined_call_operand.vmem [shape: bf16[4,8], index: 0, kind: input, shape index: {}]   ;;  %s146_s1 = inlined_call_operand.vmem [shape: bf16[32,1], index: 1, kind: output, shape index: {}]  }
   0x1   :  { %v13_v0 = vld [vmem:[%s145_s0] sm:$0x3]  ;;  %s111_s0 = smov 127   ;;  %s114_s10 = smov 126  }
   0x2   :  { %v14_v1 = vunpack.c.l.bf16 %v13_v0  ;;  %s115_s11 = smov 124   ;;  %s116_s12 = smov 122  }
   0x3   :  { %s117_s13 = smov 121  }
   0x4   :  { %16 = vst [vmem:[#allocation1] sm:$0xf] %v14_v1 }
   0xb   :  { %v20_v2 = vld [vmem:[#allocation1] sm:$0xf]  }
   0xc   :  { %v32_v3 = vld [vmem:[#allocation1] sm:$0xf]   ;;  %21 = vrot.lane.b32.xlu0 %v20_v2, %s111_s0 }
   0xd   :  { %33 = vrot.lane.b32.xlu1 %v32_v3, %s112_s8  ;;  %v44_v4 = vld [vmem:[#allocation1] sm:$0xf]  }
   0xe   :  { %45 = vrot.lane.b32.xlu2 %v44_v4, %s113_s9  ;;  %v26_v5 = vld [vmem:[#allocation1] sm:$0xf]  }
   0xf   :  { %v38_v6 = vld [vmem:[#allocation1] sm:$0xf]  }
  0x10   :  { %v50_v7 = vld [vmem:[#allocation1] sm:$0xf]  }
  0x11   :  { %v56_v8 = vld [vmem:[#allocation1] sm:$0xf]  }
  0x12   :  { %v17_v9 = vld [vmem:[#allocation1] sm:$0xf]  }
  0x13   :  { %19 = vst.msk [vmem:[#allocation0] ss:$8 sm:$0xf] %vm18_vm0, %v17_v9  }
  0x14   :  { %27 = vrot.lane.b32.xlu0 %v26_v5, %s114_s10 }
  0x15   :  { %39 = vrot.lane.b32.xlu1 %v38_v6, %s115_s11 }
  0x16   :  { %51 = vrot.lane.b32.xlu2 %v50_v7, %s116_s12 }
  0x1c   :  { %57 = vrot.lane.b32.xlu0 %v56_v8, %s117_s13 }
  0x68   :  { %v46_v10 = vpop.permute.xlu2 %45  }
  0x69   :  { %49 = vst.msk [vmem:[#allocation0 + $0x5] ss:$8 sm:$0xf] %vm18_vm0, %v46_v10  }
  0x70   :  { %v52_v11 = vpop.permute.xlu2 %51  }
  0x71   :  { %55 = vst.msk [vmem:[#allocation0 + $0x6] ss:$8 sm:$0xf] %vm18_vm0, %v52_v11  }
  0x7e   :  { %v22_v12 = vpop.permute.xlu0 %21  }
  0x7f   :  { %v34_v13 = vpop.permute.xlu1 %33   ;;  %25 = vst.msk [vmem:[#allocation0 + $0x1] ss:$8 sm:$0xf] %vm18_vm0, %v22_v12  }
  0x80   :  { %37 = vst.msk [vmem:[#allocation0 + $0x3] ss:$8 sm:$0xf] %vm18_vm0, %v34_v13  }
  0x86   :  { %v28_v14 = vpop.permute.xlu0 %27  }
  0x87   :  { %v40_v15 = vpop.permute.xlu1 %39   ;;  %31 = vst.msk [vmem:[#allocation0 + $0x2] ss:$8 sm:$0xf] %vm18_vm0, %v28_v14  }
  0x88   :  { %43 = vst.msk [vmem:[#allocation0 + $0x4] ss:$8 sm:$0xf] %vm18_vm0, %v40_v15  }
  0x8e   :  { %v58_v16 = vpop.permute.xlu0 %57  }
  0x8f   :  { %61 = vst.msk [vmem:[#allocation0 + $0x7] ss:$8 sm:$0xf] %vm18_vm0, %v58_v16  }
  0x96   :  { %v64_v17 = vld [vmem:[#allocation0] sm:$0xff]  ;;  %v70_v18 = vld [vmem:[#allocation0 + $0x8] sm:$0xff]  ;;  %v77_v19 = vld [vmem:[#allocation0 + $0x10] sm:$0xff] }
  0x97   :  { %v96_v20 = vpack.c.bf16 %v70_v18, %v64_v17  ;;  %v84_v21 = vld [vmem:[#allocation0 + $0x18] sm:$0xff] }
  0x98   :  { %v101_v22 = vpack.c.bf16 %v84_v21, %v77_v19 }
  0x99   :  { %97 = vst [vmem:[%s146_s1] sm:$0xff] %v96_v20  }
  0x9a   :  { %103 = vst [vmem:[%s146_s1 + $0x8] sm:$0xff] %v101_v22  }

// kernel: trans_conv_with_prelu.1
= control target key start
LH: loop header
LB: loop body
LE: loop exit
PB: predicated region body
PF: predicated region fallthrough
CT: control target
= control target key end

     0   :  { %s820_s17 = smov 0   ;;  %s822_s18 = smov 0   ;;  %s891_s0 = inlined_call_operand.vmem [shape: bf16[2,4,512], index: 0, kind: input, shape index: {}, may-alias: {0,1}]   ;;  %s892_s1 = inlined_call_operand.vmem [shape: bf16[2,4,512], index: 1, kind: input, shape index: {}, may-alias: {0,1}]   ;;  %s893_s2 = inlined_call_operand.vmem [shape: bf16[32,32], index: 2, kind: input, shape index: {}]   ;;  %s894_s3 = inlined_call_operand.<no memory space> [shape: f32[1,1], index: 3, kind: input, shape index: {}]   ;;  %s895_s4 = inlined_call_operand.vmem [shape: f32[2,32,384], index: 4, kind: output, shape index: {}]  }
   0x1   :  { %9 = sst [smem:[#allocation4]] %s894_s3  ;;  %s824_s19 = smov 0  }
   0x2 LB: > { %s27_s3 = sadd.s32 1, %s781_s18  ;;  %p673_p0 = scmp.ge.s32.totalorder %s785_s19, 1  ;;  %s785_s19 = sphi %s824_s19, %s15_s19   ;;  %s781_s18 = sphi %s822_s18, %s897_s18   ;;  %s777_s17 = sphi %s820_s17, %s896_s17  }
   0x3   : > { %p29_p1 = scmp.ge.s32.totalorder %s27_s3, 2  ;;  %p215_p2 = scmp.lt.s32.totalorder %s785_s19, 3 }
   0x5   : > { %s899_s3 = smov (%p29_p1, %s27_s3), 0  ;;  %p216_p3 = pnand %p673_p0, %p215_p2 }
   0x6   : > { %p268_p4 = scmp.lt.s32.totalorder (!%p216_p3), %s777_s17, 1  ;;  %s787_s28 = smov (!%p216_p3), 127  }
   0x7   : > { %219 = sbr.rel (%p216_p3) target bundleno = 352 (0x160), region = 36  ;;  %s788_s29 = smov (!%p216_p3), 111  }
   0x8   : > { %s789_s30 = smov (!%p216_p3), 110   ;;  %s514_s9 = sld [smem:[#allocation4]] (!%p216_p3) }
   0xc   : > { %s901_s17 = smov (!%p268_p4, %s777_s17), 1  ;;  %v383_v12 = vlaneseq  ;;  %v790_v14 = vmov 0.0   ;;  %v791_v17 = vmov 0.0|0.0   ;;  %vm333_vm1 = vcmask 1039360   ;;  %v722_v51 = vld [vmem:[%s893_s2] sm:$0xff]  ;;  %v723_v58 = vld [vmem:[%s893_s2 + $0x8] sm:$0xff] }
   0xd   : > { %s719_s20 = sshll.u32 %s901_s17, 3  ;;  %395 = vst [vmem:[#allocation3 + $0x2c] sm:$0xf] %v791_v17  ;;  %vm331_vm2 = vcmask 1043456   ;;  %vm354_vm3 = vcmask 908288   ;;  %vm376_vm4 = vcmask 900096  }
   0xe   : > { %s275_s23 = scalar_lea.vmem %s891_s0, %s719_s20  ;;  %s721_s24 = sadd.s32 6, %s719_s20  ;;  %v384_v13 = vshrl.u32 %v383_v12, 7  ;;  %394 = vst [vmem:[#allocation3 + $0x24] sm:$0xff] %v791_v17  ;;  %vm450_vm5 = vcmask 261120   ;;  %v527_v59 = vstv %s514_s9 }
   0xf   : > { %s290_s27 = scalar_lea.vmem %s892_s1, %s721_s24  ;;  %v304_v0 = vld [vmem:[%s275_s23] sm:$0x3f]  ;;  %s733_s10 = smul.u32 96, %s901_s17 }
  0x10   : > { %305 = vst [vmem:[#allocation2] sm:$0x3f] %v304_v0  ;;  %v306_v1 = vld [vmem:[%s290_s27] sm:$0x3]  ;;  %vm386_vm0 = vcmp.eq.s32.totalorder %v384_v13, 0 }
  0x11   : > { %307 = vst [vmem:[#allocation2 + $0x6] sm:$0x3] %v306_v1  ;;  %v388_v15 = vsel %vm386_vm0, 1.0, %v790_v14  ;;  %s868_s13 = scalar_lea.vmem %s895_s4, %s733_s10 }
  0x12   : > { %v390_v16 = vpack.c.bf16 %v388_v15, %v388_v15 }
  0x14   : > { %393 = vst [vmem:[#allocation3 + $0x20] sm:$0xf] %v390_v16  ;;  %v729_v19 = vld [vmem:[#allocation3 + $0x28] sm:$0xf0] }
  0x15   : > { %392 = vst [vmem:[#allocation3 + $0x18] sm:$0xff] %v390_v16  ;;  %v728_v23 = vld [vmem:[#allocation3 + $0x20] sm:$0xf0]  ;;  %v703_v27 = vld [vmem:[#allocation3 + $0x24] sm:$0xf0] }
  0x17   : > { %v308_v2 = vld [vmem:[#allocation2] sm:$0x3f] }
  0x18   : > { %310 = vst [vmem:[#allocation1] ss:$2 sm:$0xff] %v308_v2  ;;  %v317_v3 = vld [vmem:[#allocation2] sm:$0xff] }
  0x1b   : > { %v709_v18 = vld [vmem:[#allocation3 + $0x20] sm:$0xf] }
  0x1c   : > { %v710_v20 = vor.u32 %v729_v19, %v709_v18  ;;  %v701_v22 = vld [vmem:[#allocation3 + $0x18] sm:$0xf]  ;;  %v727_v24 = vld [vmem:[#allocation3 + $0x1c] sm:$0xf] }
  0x1d   : > { %v702_v26 = vor.u32 %v728_v23, %v701_v22  ;;  %v706_v29 = vor.u32 %v727_v24, %v703_v27 }
  0x1e   : > { %501 = vmatpush.bf16.msra.mxu2 %v710_v20 }
  0x1f   : > { %v311_v4 = vld.sshfl [vmem:[#allocation1] sm:$0xff pattern:$0x75643120]  ;;  %v312_v5 = vld.sshfl [vmem:[#allocation1 + $0x8] sm:$0xff pattern:$0x75643120]  ;;  %463 = vmatpush.bf16.msra.mxu0 %v702_v26  ;;  %731 = vmatpush.bf16.msra.mxu3 %v702_v26 }
  0x20   : > { %316 = vst [vmem:[#allocation3 + $0x8] sm:$0x3] %v312_v5  ;;  %482 = vmatpush.bf16.msra.mxu1 %v706_v29 }
  0x21   : > { %320 = vst [vmem:[#allocation1 + $0x1] ss:$2 sm:$0xff] %v317_v3 }
  0x22   : > { %315 = vst [vmem:[#allocation3] sm:$0x33] %v311_v4 }
  0x28   : > { %v323_v6 = vld.sshfl [vmem:[#allocation1 + $0x8] sm:$0xff pattern:$0x75643120]  ;;  %v321_v7 = vld.sshfl [vmem:[#allocation1] sm:$0xff pattern:$0x75643120] }
  0x29   : > { %327 = vrot.lane.b32.xlu0 %v323_v6, %s787_s28  ;;  %342 = vst [vmem:[#allocation1] ss:$2 sm:$0xff] %v317_v3 }
  0x30   : > { %v345_v8 = vld.sshfl [vmem:[#allocation1 + $0x8] sm:$0xff pattern:$0x75643120]  ;;  %v343_v9 = vld.sshfl [vmem:[#allocation1] sm:$0xff pattern:$0x75643120] }
  0x31   : > { %349 = vrot.lane.b32.xlu0 %v345_v8, %s788_s29  ;;  %364 = vst [vmem:[#allocation1 + $0x1] ss:$2 sm:$0xff] %v317_v3  ;;  %347 = vrot.lane.b32.xlu2 %v343_v9, %s788_s29 }
  0x38   : > { %v367_v10 = vld.sshfl [vmem:[#allocation1 + $0x8] sm:$0xff pattern:$0x75643120]  ;;  %v365_v11 = vld.sshfl [vmem:[#allocation1] sm:$0xff pattern:$0x75643120] }
  0x39   : > { %371 = vrot.lane.b32.xlu1 %v367_v10, %s789_s30  ;;  %369 = vrot.lane.b32.xlu2 %v365_v11, %s789_s30 }
  0x41   : > { %325 = vrot.lane.b32.xlu1 %v321_v7, %s787_s28 }
  0x8b   : > { %v348_v28 = vpop.permute.xlu2 %347 }
  0x8c   : > { %v351_v31 = vrot.slane %v348_v28, 4 }
  0x93   : > { %v370_v37 = vpop.permute.xlu2 %369 }
  0x94   : > { %v373_v38 = vrot.slane %v370_v37, 4 }
  0x9b   : > { %v328_v21 = vpop.permute.xlu0 %327 }
  0x9c   : > { %v330_v25 = vrot.slane %v328_v21, 4 }
  0x9e   : > { %v335_v30 = vsel %vm333_vm1, %v328_v21, %v330_v25 }
  0x9f   : > { %339 = vst [vmem:[#allocation3 + $0x8] sm:$0xc] %v335_v30 }
  0xa3   : > { %v350_v32 = vpop.permute.xlu0 %349 }
  0xa4   : > { %v352_v33 = vrot.slane %v350_v32, 4 }
  0xa6   : > { %v353_v34 = vsel %vm331_vm2, %v351_v31, %v352_v33  ;;  %v356_v35 = vsel %vm354_vm3, %v350_v32, %v352_v33  ;;  %v697_v47 = vld [vmem:[#allocation3 + $0x8] sm:$0xf] }
  0xa7   : > { %v355_v36 = vsel %vm354_vm3, %v348_v28, %v353_v34  ;;  %360 = vst [vmem:[#allocation3 + $0x14] sm:$0x3] %v356_v35 }
  0xa8   : > { %359 = vst [vmem:[#allocation3 + $0xc] sm:$0x33] %v355_v36 }
  0xab   : > { %v372_v39 = vpop.permute.xlu1 %371 }
  0xac   : > { %v374_v40 = vrot.slane %v372_v39, 4 }
  0xae   : > { %v378_v41 = vsel %vm376_vm4, %v372_v39, %v374_v40  ;;  %v375_v42 = vsel %vm331_vm2, %v373_v38, %v374_v40 }
  0xaf   : > { %382 = vst [vmem:[#allocation3 + $0x14] sm:$0xc] %v378_v41  ;;  %v377_v43 = vsel %vm376_vm4, %v370_v37, %v375_v42 }
  0xb0   : > { %381 = vst [vmem:[#allocation3 + $0xc] sm:$0xcc] %v377_v43 }
  0xb3   : > { %v326_v44 = vpop.permute.xlu1 %325 }
  0xb4   : > { %v329_v45 = vrot.slane %v326_v44, 4 }
  0xb6   : > { %v332_v46 = vsel %vm331_vm2, %v329_v45, %v330_v25  ;;  %v726_v48 = vld [vmem:[#allocation3 + $0x10] sm:$0xf0] }
  0xb7   : > { %v334_v49 = vsel %vm333_vm1, %v326_v44, %v332_v46  ;;  %v698_v50 = vor.u32 %v726_v48, %v697_v47  ;;  %v725_v52 = vld [vmem:[#allocation3 + $0x8] sm:$0xf0]  ;;  %v691_v55 = vld [vmem:[#allocation3 + $0xc] sm:$0xf0] }
  0xb8   : > { %338 = vst [vmem:[#allocation3] sm:$0xcc] %v334_v49 }
  0xb9   : > { %502 = vmatpush.bf16.msra.mxu2 %v698_v50 }
  0xbc   : > { %715 = vmatmul.msk.bf16.vlgmr.msra.gmra.mxu2 %vm450_vm5, %v722_v51 }
  0xbf   : > { %v689_v53 = vld [vmem:[#allocation3] sm:$0xf]  ;;  %v724_v54 = vld [vmem:[#allocation3 + $0x4] sm:$0xf] }
  0xc0   : > { %v690_v56 = vor.u32 %v725_v52, %v689_v53  ;;  %v694_v57 = vor.u32 %v724_v54, %v691_v55 }
  0xc2   : > { %464 = vmatpush.bf16.msra.mxu0 %v690_v56  ;;  %732 = vmatpush.bf16.msra.mxu3 %v690_v56 }
  0xc3   : > { %483 = vmatpush.bf16.msra.mxu1 %v694_v57 }
  0xc5   : > { %712 = vmatmul.msk.bf16.vlgmr.msra.gmra.mxu3 %vm450_vm5, %v723_v58  ;;  %711 = vmatmul.msk.bf16.vlgmr.msra.gmra.mxu0 %vm450_vm5, %v722_v51 }
  0xc6   : > { %713 = vmatmul.msk.bf16.vlgmr.msra.gmra.mxu1 %vm450_vm5, %v722_v51 }
  0xcc   : > { %716 = vmatmul.msk.bf16.gmra.mxu2 %vm450_vm5, %v723_v58 }
  0xd6   : > { %714 = vmatmul.msk.bf16.gmra.mxu1 %vm450_vm5, %v723_v58 }
 0x13f   : > { %v504_v60 = vpop.f32.mrf.mxu2 }
 0x140   : > { %vm517_vm6 = vcmp.gt.f32.partialorder %v504_v60, 0.0  ;;  %v530_v61 = vmul.f32 %v527_v59, %v504_v60 }
 0x142   : > { %v542_v62 = vsel %vm517_vm6, %v504_v60, %v530_v61  ;;  %v466_v63 = vpop.f32.mrf.mxu0 }
 0x143   : > { %554 = vst [vmem:[%s868_s13 + $0x10] sm:$0xff] %v542_v62  ;;  %v485_v0 = vpop.f32.mrf.mxu1  ;;  %vm515_vm7 = vcmp.gt.f32.partialorder %v466_v63, 0.0  ;;  %v528_v1 = vmul.f32 %v527_v59, %v466_v63 }
 0x144   : > { %vm516_vm8 = vcmp.gt.f32.partialorder %v485_v0, 0.0  ;;  %v529_v2 = vmul.f32 %v527_v59, %v485_v0 }
 0x145   : > { %v540_v3 = vsel %vm515_vm7, %v466_v63, %v528_v1 }
 0x146   : > { %v541_v4 = vsel %vm516_vm8, %v485_v0, %v529_v2  ;;  %552 = vst [vmem:[%s868_s13] sm:$0xff] %v540_v3 }
 0x147   : > { %553 = vst [vmem:[%s868_s13 + $0x8] sm:$0xff] %v541_v4  ;;  %v506_v5 = vpop.f32.mrf.mxu2 }
 0x148   : > { %vm520_vm9 = vcmp.gt.f32.partialorder %v506_v5, 0.0  ;;  %v533_v6 = vmul.f32 %v527_v59, %v506_v5  ;;  %v471_v7 = vpop.f32.mrf.mxu3 }
 0x149   : > { %vm521_vm10 = vcmp.gt.f32.partialorder %v471_v7, 0.0  ;;  %v534_v8 = vmul.f32 %v527_v59, %v471_v7 }
 0x14a   : > { %v545_v9 = vsel %vm520_vm9, %v506_v5, %v533_v6  ;;  %v468_v10 = vpop.f32.mrf.mxu0 }
 0x14b   : > { %557 = vst [vmem:[%s868_s13 + $0x28] sm:$0xff] %v545_v9  ;;  %v546_v11 = vsel %vm521_vm10, %v471_v7, %v534_v8  ;;  %v487_v12 = vpop.f32.mrf.mxu1  ;;  %vm518_vm11 = vcmp.gt.f32.partialorder %v468_v10, 0.0  ;;  %v531_v13 = vmul.f32 %v527_v59, %v468_v10 }
 0x14c   : > { %558 = vst [vmem:[%s868_s13 + $0x30] sm:$0xff] %v546_v11  ;;  %vm519_vm12 = vcmp.gt.f32.partialorder %v487_v12, 0.0  ;;  %v532_v14 = vmul.f32 %v527_v59, %v487_v12 }
 0x14d   : > { %v543_v15 = vsel %vm518_vm11, %v468_v10, %v531_v13 }
 0x14e   : > { %v544_v16 = vsel %vm519_vm12, %v487_v12, %v532_v14  ;;  %555 = vst [vmem:[%s868_s13 + $0x18] sm:$0xff] %v543_v15 }
 0x14f   : > { %556 = vst [vmem:[%s868_s13 + $0x20] sm:$0xff] %v544_v16  ;;  %v509_v17 = vpop.f32.mrf.mxu2 }
 0x150   : > { %vm523_vm13 = vcmp.gt.f32.partialorder %v509_v17, 0.0  ;;  %v536_v18 = vmul.f32 %v527_v59, %v509_v17  ;;  %v473_v19 = vpop.f32.mrf.mxu3 }
 0x151   : > { %vm524_vm14 = vcmp.gt.f32.partialorder %v473_v19, 0.0  ;;  %v537_v20 = vmul.f32 %v527_v59, %v473_v19 }
 0x152   : > { %v548_v21 = vsel %vm523_vm13, %v509_v17, %v536_v18 }
 0x153   : > { %560 = vst [vmem:[%s868_s13 + $0x40] sm:$0xff] %v548_v21  ;;  %v549_v22 = vsel %vm524_vm14, %v473_v19, %v537_v20  ;;  %v490_v23 = vpop.f32.mrf.mxu1 }
 0x154   : > { %561 = vst [vmem:[%s868_s13 + $0x48] sm:$0xff] %v549_v22  ;;  %vm522_vm15 = vcmp.gt.f32.partialorder %v490_v23, 0.0  ;;  %v535_v24 = vmul.f32 %v527_v59, %v490_v23 }
 0x156   : > { %v547_v25 = vsel %vm522_vm15, %v490_v23, %v535_v24 }
 0x157   : > { %559 = vst [vmem:[%s868_s13 + $0x38] sm:$0xff] %v547_v25  ;;  %v511_v26 = vpop.f32.mrf.mxu2 }
 0x158   : > { %vm526_vm0 = vcmp.gt.f32.partialorder %v511_v26, 0.0  ;;  %v539_v27 = vmul.f32 %v527_v59, %v511_v26 }
 0x15a   : > { %v551_v28 = vsel %vm526_vm0, %v511_v26, %v539_v27 }
 0x15b   : > { %563 = vst [vmem:[%s868_s13 + $0x58] sm:$0xff] %v551_v28  ;;  %v492_v29 = vpop.f32.mrf.mxu1 }
 0x15c   : > { %vm525_vm1 = vcmp.gt.f32.partialorder %v492_v29, 0.0  ;;  %v538_v30 = vmul.f32 %v527_v59, %v492_v29 }
 0x15e   : > { %v550_v31 = vsel %vm525_vm1, %v492_v29, %v538_v30 }
 0x15f   : > { %562 = vst [vmem:[%s868_s13 + $0x50] sm:$0xff] %v550_v31 }
 0x160 PF: > { %s15_s19 = sadd.s32 1, %s785_s19   ;;  %s896_s17 = smov %s781_s18 }
 0x161   : > { %p12_p5 = scmp.ge.s32.totalorder %s15_s19, 4   ;;  %s897_s18 = smov %s899_s3 }
 0x163   :  { %14 = sbr.rel (!%p12_p5) target bundleno = 2 (0x2), region = 71 }

</bundles_post_ra>
